<compile_context>
chip_gen: v7x
topology: tpu7x:2x2x1
jax: 0.10.0
libtpu: 0.0.40
codegen_flags: <defaults>
</compile_context>

<pallas_src>
import functools

import jax
import jax.numpy as jnp
from jax.experimental import pallas as pl
from jax.experimental.pallas import tpu as pltpu


NEG_SLOPE = 0.01  # torch.nn.functional.leaky_relu default negative_slope


def _leaky_relu(x):
    # mul + max (2 VALU ops) instead of compare + select.
    return jnp.maximum(x, NEG_SLOPE * x)


def _round_up(n, m):
    return ((n + m - 1) // m) * m


def mlp2_kernel(x_ref, w1_ref, b1_ref, w2_ref, b2_ref, w3_ref, b3_ref, o_ref):
    # Layer 1: (tile_b, in) @ (in, hidden) + (1, hidden) -> leaky_relu
    h1 = jnp.dot(x_ref[...], w1_ref[...], preferred_element_type=jnp.float32)
    h1 = _leaky_relu(h1 + b1_ref[...])
    # Layer 2: (tile_b, hidden) @ (hidden, hidden) + (1, hidden) -> leaky_relu
    h2 = jnp.dot(h1, w2_ref[...], preferred_element_type=jnp.float32)
    h2 = _leaky_relu(h2 + b2_ref[...])
    # Layer 3: (tile_b, hidden) @ (hidden, out) + (1, out) -> leaky_relu
    y = jnp.dot(h2, w3_ref[...], preferred_element_type=jnp.float32)
    y = _leaky_relu(y + b3_ref[...])
    o_ref[...] = y.astype(o_ref.dtype)


@functools.partial(jax.jit, static_argnames=("tile_b",))
def mlp2_forward(x, w1, b1, w2, b2, w3, b3, *, tile_b=None):
    """Fused MLP2 forward.

    x:  (B, inputs) f32
    w1: (inputs, hidden), b1: (1, hidden)
    w2: (hidden, hidden), b2: (1, hidden)
    w3: (hidden, outputs), b3: (1, outputs)
    Returns (B, outputs) f32.
    """
    B, in_dim = x.shape
    hid = w1.shape[1]
    out_dim = w3.shape[1]

    # --- batch tiling --------------------------------------------------------
    # Big tiles amortize the ~0.35 us fixed per-step overhead; tile rows are
    # 16 f32 in + 8 f32 out, so even tile_b=4096 double-buffered is < 1 MB
    # of VMEM (fits every generation's scoped default).
    if tile_b is None:
        tile_b = min(4096, _round_up(B, 8))
    tile_b = _round_up(int(tile_b), 8)

    # Ragged last block is handled by Pallas: OOB input rows are just unused
    # garbage rows (rows are independent), OOB output rows are masked on write.
    grid = (pl.cdiv(B, tile_b),)
    resident = lambda i: (0, 0)  # weights/biases: same block every step -> stay in VMEM

    y = pl.pallas_call(
        mlp2_kernel,
        out_shape=jax.ShapeDtypeStruct((B, out_dim), jnp.float32),
        grid=grid,
        in_specs=[
            pl.BlockSpec((tile_b, in_dim), lambda i: (i, 0)),   # x: batch-tiled
            pl.BlockSpec((in_dim, hid), resident),              # w1
            pl.BlockSpec((1, hid), resident),                   # b1
            pl.BlockSpec((hid, hid), resident),                 # w2
            pl.BlockSpec((1, hid), resident),                   # b2
            pl.BlockSpec((hid, out_dim), resident),             # w3
            pl.BlockSpec((1, out_dim), resident),               # b3
        ],
        out_specs=pl.BlockSpec((tile_b, out_dim), lambda i: (i, 0)),
        compiler_params=pltpu.CompilerParams(
            dimension_semantics=("parallel",),  # megacore split where applicable
        ),
    )(x, w1, b1, w2, b2, w3, b3)

    return y


def init_linear_params(key, fan_in, fan_out):
    """Deterministic init mimicking torch.nn.Linear (uniform +/- 1/sqrt(fan_in)).
    Weight is stored as (fan_in, fan_out), i.e. transposed vs PyTorch."""
    kw, kb = jax.random.split(key)
    bound = 1.0 / jnp.sqrt(fan_in)
    w = jax.random.uniform(kw, (fan_in, fan_out), jnp.float32, -bound, bound)
    b = jax.random.uniform(kb, (1, fan_out), jnp.float32, -bound, bound)
    return w, b


def reference_forward(x, w1, b1, w2, b2, w3, b3):
    # Matches MLP2Model.forward: activation applied after each of the three Linears.
    h1 = _leaky_relu(x @ w1 + b1)
    h2 = _leaky_relu(h1 @ w2 + b2)
    return _leaky_relu(h2 @ w3 + b3)


if __name__ == "__main__":
    # Small shapes consistent with the module: inputs=16, hidden=32, outputs=8
    batch, inputs, hidden, outputs = 8, 16, 32, 8

    key = jax.random.PRNGKey(0)
    kx, k1, k2, k3, kx2 = jax.random.split(key, 5)

    x = jax.random.normal(kx, (batch, inputs), jnp.float32)
    w1, b1 = init_linear_params(k1, inputs, hidden)
    w2, b2 = init_linear_params(k2, hidden, hidden)
    w3, b3 = init_linear_params(k3, hidden, outputs)

    # Small-batch run (single grid step, block == full batch).
    y = mlp2_forward(x, w1, b1, w2, b2, w3, b3)
    y = jax.block_until_ready(y)
    y_ref = reference_forward(x, w1, b1, w2, b2, w3, b3)
    assert y.shape == (batch, outputs)
    assert jnp.allclose(y, y_ref, atol=1e-5, rtol=1e-5)

    # Larger, non-multiple batch to exercise batch tiling / ragged last block.
    big_b = 300
    xb = jax.random.normal(kx2, (big_b, inputs), jnp.float32)
    yb = mlp2_forward(xb, w1, b1, w2, b2, w3, b3, tile_b=128)
    yb = jax.block_until_ready(yb)
    yb_ref = reference_forward(xb, w1, b1, w2, b2, w3, b3)
    assert yb.shape == (big_b, outputs)
    assert jnp.allclose(yb, yb_ref, atol=1e-5, rtol=1e-5)

    print("KERNEL_OK")
</pallas_src>

<mosaic_0001>
module attributes {stable_mosaic.version = 11 : i64} {
  func.func @mlp2_kernel(%arg0: i32, %arg1: memref<8x16xf32, #tpu.memory_space<vmem>>, %arg2: memref<16x32xf32, #tpu.memory_space<vmem>>, %arg3: memref<1x32xf32, #tpu.memory_space<vmem>>, %arg4: memref<32x32xf32, #tpu.memory_space<vmem>>, %arg5: memref<1x32xf32, #tpu.memory_space<vmem>>, %arg6: memref<32x8xf32, #tpu.memory_space<vmem>>, %arg7: memref<1x8xf32, #tpu.memory_space<vmem>>, %arg8: memref<8x8xf32, #tpu.memory_space<vmem>>) attributes {dimension_semantics = [#tpu.dimension_semantics<parallel>], iteration_bounds = array<i64: 1>, scalar_prefetch = 0 : i64, scratch_operands = 0 : i64, tpu.core_type = #tpu.core_type<tc>, window_params = [{transform_indices = @transform_0, window_bounds = array<i64: 8, 16>}, {pipeline_mode = #tpu.pipeline_mode<synchronous>, transform_indices = @transform_1, window_bounds = array<i64: 16, 32>}, {pipeline_mode = #tpu.pipeline_mode<synchronous>, transform_indices = @transform_2, window_bounds = array<i64: 1, 32>}, {pipeline_mode = #tpu.pipeline_mode<synchronous>, transform_indices = @transform_3, window_bounds = array<i64: 32, 32>}, {pipeline_mode = #tpu.pipeline_mode<synchronous>, transform_indices = @transform_4, window_bounds = array<i64: 1, 32>}, {pipeline_mode = #tpu.pipeline_mode<synchronous>, transform_indices = @transform_5, window_bounds = array<i64: 32, 8>}, {pipeline_mode = #tpu.pipeline_mode<synchronous>, transform_indices = @transform_6, window_bounds = array<i64: 1, 8>}, {transform_indices = @transform_7, window_bounds = array<i64: 8, 8>}]} {
    %c0 = arith.constant 0 : index
    %c0_0 = arith.constant 0 : index
    %0 = vector.load %arg1[%c0, %c0_0] : memref<8x16xf32, #tpu.memory_space<vmem>>, vector<8x16xf32>
    %c0_1 = arith.constant 0 : index
    %c0_2 = arith.constant 0 : index
    %1 = vector.load %arg2[%c0_1, %c0_2] : memref<16x32xf32, #tpu.memory_space<vmem>>, vector<16x32xf32>
    %cst = arith.constant dense<0.000000e+00> : vector<8x32xf32>
    %2 = tpu.matmul %0, %1, %cst {dimension_numbers = #tpu.dot_dimension_numbers<[1], [0], [0], [1], [0, 0, 1, 1], [], []>} : vector<8x16xf32>, vector<16x32xf32>, vector<8x32xf32> -> vector<8x32xf32>
    %c0_3 = arith.constant 0 : index
    %c0_4 = arith.constant 0 : index
    %3 = vector.load %arg3[%c0_3, %c0_4] : memref<1x32xf32, #tpu.memory_space<vmem>>, vector<1x32xf32>
    %4 = vector.broadcast %3 : vector<1x32xf32> to vector<8x32xf32>
    %5 = arith.addf %2, %4 : vector<8x32xf32>
    %cst_5 = arith.constant 0.00999999977 : f32
    %6 = vector.broadcast %cst_5 : f32 to vector<8x32xf32>
    %7 = arith.mulf %6, %5 : vector<8x32xf32>
    %8 = arith.maximumf %5, %7 : vector<8x32xf32>
    %c0_6 = arith.constant 0 : index
    %c0_7 = arith.constant 0 : index
    %9 = vector.load %arg4[%c0_6, %c0_7] : memref<32x32xf32, #tpu.memory_space<vmem>>, vector<32x32xf32>
    %cst_8 = arith.constant dense<0.000000e+00> : vector<8x32xf32>
    %10 = tpu.matmul %8, %9, %cst_8 {dimension_numbers = #tpu.dot_dimension_numbers<[1], [0], [0], [1], [0, 0, 1, 1], [], []>} : vector<8x32xf32>, vector<32x32xf32>, vector<8x32xf32> -> vector<8x32xf32>
    %c0_9 = arith.constant 0 : index
    %c0_10 = arith.constant 0 : index
    %11 = vector.load %arg5[%c0_9, %c0_10] : memref<1x32xf32, #tpu.memory_space<vmem>>, vector<1x32xf32>
    %12 = vector.broadcast %11 : vector<1x32xf32> to vector<8x32xf32>
    %13 = arith.addf %10, %12 : vector<8x32xf32>
    %cst_11 = arith.constant 0.00999999977 : f32
    %14 = vector.broadcast %cst_11 : f32 to vector<8x32xf32>
    %15 = arith.mulf %14, %13 : vector<8x32xf32>
    %16 = arith.maximumf %13, %15 : vector<8x32xf32>
    %c0_12 = arith.constant 0 : index
    %c0_13 = arith.constant 0 : index
    %17 = vector.load %arg6[%c0_12, %c0_13] : memref<32x8xf32, #tpu.memory_space<vmem>>, vector<32x8xf32>
    %cst_14 = arith.constant dense<0.000000e+00> : vector<8x8xf32>
    %18 = tpu.matmul %16, %17, %cst_14 {dimension_numbers = #tpu.dot_dimension_numbers<[1], [0], [0], [1], [0, 0, 1, 1], [], []>} : vector<8x32xf32>, vector<32x8xf32>, vector<8x8xf32> -> vector<8x8xf32>
    %c0_15 = arith.constant 0 : index
    %c0_16 = arith.constant 0 : index
    %19 = vector.load %arg7[%c0_15, %c0_16] : memref<1x8xf32, #tpu.memory_space<vmem>>, vector<1x8xf32>
    %20 = vector.broadcast %19 : vector<1x8xf32> to vector<8x8xf32>
    %21 = arith.addf %18, %20 : vector<8x8xf32>
    %cst_17 = arith.constant 0.00999999977 : f32
    %22 = vector.broadcast %cst_17 : f32 to vector<8x8xf32>
    %23 = arith.mulf %22, %21 : vector<8x8xf32>
    %24 = arith.maximumf %21, %23 : vector<8x8xf32>
    %c0_18 = arith.constant 0 : index
    %c0_19 = arith.constant 0 : index
    %25 = vector.load %arg8[%c0_18, %c0_19] : memref<8x8xf32, #tpu.memory_space<vmem>>, vector<8x8xf32>
    tpu.vector_store %arg8[%c0_18, %c0_19], %24 {strides = array<i32>} : memref<8x8xf32, #tpu.memory_space<vmem>>, vector<8x8xf32>,
    return
  }
  func.func @transform_0(%arg0: i32) -> (i32, i32) {
    %c0_i32 = arith.constant 0 : i32
    %c0_i32_0 = arith.constant 0 : i32
    return %arg0, %c0_i32 : i32, i32
  }
  func.func @transform_1(%arg0: i32) -> (i32, i32) {
    %c0_i32 = arith.constant 0 : i32
    %c0_i32_0 = arith.constant 0 : i32
    %c0_i32_1 = arith.constant 0 : i32
    return %c0_i32, %c0_i32_0 : i32, i32
  }
  func.func @transform_2(%arg0: i32) -> (i32, i32) {
    %c0_i32 = arith.constant 0 : i32
    %c0_i32_0 = arith.constant 0 : i32
    %c0_i32_1 = arith.constant 0 : i32
    return %c0_i32, %c0_i32_0 : i32, i32
  }
  func.func @transform_3(%arg0: i32) -> (i32, i32) {
    %c0_i32 = arith.constant 0 : i32
    %c0_i32_0 = arith.constant 0 : i32
    %c0_i32_1 = arith.constant 0 : i32
    return %c0_i32, %c0_i32_0 : i32, i32
  }
  func.func @transform_4(%arg0: i32) -> (i32, i32) {
    %c0_i32 = arith.constant 0 : i32
    %c0_i32_0 = arith.constant 0 : i32
    %c0_i32_1 = arith.constant 0 : i32
    return %c0_i32, %c0_i32_0 : i32, i32
  }
  func.func @transform_5(%arg0: i32) -> (i32, i32) {
    %c0_i32 = arith.constant 0 : i32
    %c0_i32_0 = arith.constant 0 : i32
    %c0_i32_1 = arith.constant 0 : i32
    return %c0_i32, %c0_i32_0 : i32, i32
  }
  func.func @transform_6(%arg0: i32) -> (i32, i32) {
    %c0_i32 = arith.constant 0 : i32
    %c0_i32_0 = arith.constant 0 : i32
    %c0_i32_1 = arith.constant 0 : i32
    return %c0_i32, %c0_i32_0 : i32, i32
  }
  func.func @transform_7(%arg0: i32) -> (i32, i32) {
    %c0_i32 = arith.constant 0 : i32
    %c0_i32_0 = arith.constant 0 : i32
    return %arg0, %c0_i32 : i32, i32
  }
}

</mosaic_0001>

<bundles_post_ra>
// kernel: mlp2_forward.1
= control target key start
LH: loop header
LB: loop body
LE: loop exit
PB: predicated region body
PF: predicated region fallthrough
CT: control target
= control target key end

     0   :  { %12 = vsyncpa [#allocation3], 0  ;;  %s541_s0 = inlined_call_operand.hbm [shape: f32[8,16], index: 0, kind: input, shape index: {}]   ;;  %s542_s1 = inlined_call_operand.vmem [shape: f32[16,32], index: 1, kind: input, shape index: {}]   ;;  %s543_s2 = inlined_call_operand.vmem [shape: f32[1,32], index: 2, kind: input, shape index: {}]   ;;  %s544_s3 = inlined_call_operand.vmem [shape: f32[32,32], index: 3, kind: input, shape index: {}]   ;;  %s545_s4 = inlined_call_operand.vmem [shape: f32[1,32], index: 4, kind: input, shape index: {}]   ;;  %s546_s5 = inlined_call_operand.vmem [shape: f32[32,8], index: 5, kind: input, shape index: {}]   ;;  %s547_s6 = inlined_call_operand.vmem [shape: f32[1,8], index: 6, kind: input, shape index: {}]   ;;  %s548_s7 = inlined_call_operand.hbm [shape: f32[8,8], index: 7, kind: output, shape index: {}]  }
   0x1   :  { %13 = vsyncpa [#allocation4], 0  ;;  %s431_s24 = smov [#allocation2]   ;;  %s383_s28 = scalar_lea.hbm %s541_s0, 128 }
   0x2   :  { %s20_s25 = sshll.u32 %s431_s24, 4  ;;  %p384_p0 = scmp.ne.s32.totalorder %s541_s0, %s383_s28  ;;  %s21_s25 = int_to_ptr.vmem [resolvable:$true] %s20_s25 }
   0x3   :  { %p387_p1 = scmp.lt.u32.totalorder %s383_s28, %s541_s0 }
   0x5   :  { %p389_p2 = pnand %p387_p1, %p384_p0 }
   0x7   :  { %392 = shalt.err (!%p389_p2)
}
   0x8   :  { %s393_s10 = scalar_lea.vmem %s21_s25, 128  ;;  %p398_p4 = scmp.lt.s32.totalorder %s21_s25, %s21_s25 }
   0x9   :  { %p394_p3 = scmp.ne.s32.totalorder %s21_s25, %s393_s10  ;;  %p399_p5 = scmp.lt.s32.totalorder %s393_s10, %s393_s10 }
   0xb   :  { %p400_p6 = por %p399_p5, %p398_p4 }
   0xd   :  { %p401_p7 = pnand %p400_p6, %p394_p3 }
   0xf   :  { %404 = shalt.err (!%p401_p7)
}
  0x10   :  { %23 = dma.hbm_to_vmem [thread:$0]  %s541_s0, 128, %s21_s25, [#allocation3]  }
  0x11   :  { %427 = dma.done.wait [#allocation3], 128  }
  0x12   :  { %428 = vsyncadd [#allocation3], 4294967168  ;;  %v432_v0 = vmov 0.0|0.0   ;;  %vm433_vm0 = vmmov 0   ;;  %v434_v1 = vmov 0.0   ;;  %v40_v2 = vld [vmem:[%s542_s1] sm:$0xff] }
  0x13   :  { %363 = vmatprep.subr.bf16.mxu0 %v432_v0  ;;  %338 = vmatprep.mubr.msk.f32.mxu0 %vm433_vm0, %v434_v1  ;;  %v41_v3 = vld [vmem:[%s542_s1 + $0x8] sm:$0xff]  ;;  %v39_v5 = vld [vmem:[#allocation2] sm:$0xff]  ;;  %vm49_vm1 = vcmask 130048   ;;  %v127_v9 = vld [vmem:[%s544_s3 + $0x10] sm:$0xff]  ;;  %vm136_vm2 = vcmask 261120   ;;  %vm298_vm3 = vcmask 64512  }
  0x14   :  { %366 = vmatprep.subr.bf16.mxu1 %v432_v0  ;;  %349 = vmatprep.mubr.msk.f32.mxu1 %vm433_vm0, %v434_v1  ;;  %v364_v4 = vpack.c.bf16 %v41_v3, %v40_v2  ;;  %v125_v6 = vld [vmem:[%s544_s3] sm:$0xff]  ;;  %v126_v7 = vld [vmem:[%s544_s3 + $0x8] sm:$0xff]  ;;  %v128_v10 = vld [vmem:[%s544_s3 + $0x18] sm:$0xff] }
  0x15   :  { %v367_v8 = vpack.c.bf16 %v126_v7, %v125_v6  ;;  %v370_v11 = vpack.c.bf16 %v128_v10, %v127_v9  ;;  %v315_v12 = vld [vmem:[%s543_s2] ss:$0 sm:$0xff]  ;;  %v213_v19 = vld [vmem:[%s546_s5 + $0x8] sm:$0xff]  ;;  %v214_v21 = vld [vmem:[%s546_s5 + $0x10] sm:$0xff] }
  0x16   :  { %365 = vmatpush3.bf16.msra.mxu0 %v364_v4  ;;  %v212_v18 = vld [vmem:[%s546_s5] sm:$0xff]  ;;  %v215_v22 = vld [vmem:[%s546_s5 + $0x18] sm:$0xff]  ;;  %s435_s5 = smov [#allocation5]  }
  0x17   :  { %372 = vmatprep.subr.bf16.mxu0 %v432_v0  ;;  %368 = vmatpush3.bf16.msra.mxu1 %v367_v8  ;;  %v373_v20 = vpack.c.bf16 %v213_v19, %v212_v18  ;;  %v376_v23 = vpack.c.bf16 %v215_v22, %v214_v21  ;;  %v317_v24 = vld [vmem:[%s545_s4] ss:$0 sm:$0xff]  ;;  %s306_s12 = sshll.u32 %s435_s5, 4  ;;  %s307_s12 = int_to_ptr.vmem [resolvable:$true] %s306_s12 }
  0x18   :  { %369 = vmatprep.subr.bf16.mxu1 %v432_v0  ;;  %v319_v30 = vld [vmem:[%s547_s6] ss:$0 sm:$0xff]  ;;  %s405_s4 = scalar_lea.vmem %s307_s12, 128  ;;  %p410_p9 = scmp.lt.s32.totalorder %s307_s12, %s307_s12 }
  0x19   :  { %339 = vmatmul.mubr.msk.f32.vlgmr.msra.gmra.mrb[0].mxu0 %vm49_vm1, %v39_v5  ;;  %p406_p8 = scmp.ne.s32.totalorder %s307_s12, %s405_s4  ;;  %p411_p10 = scmp.lt.s32.totalorder %s405_s4, %s405_s4 }
  0x1a   :  { %360 = vmatprep.mubr.msk.f32.mxu0 %vm433_vm0, %v434_v1  ;;  %374 = vmatpush3.bf16.msra.mxu0 %v373_v20 }
  0x1b   :  { %371 = vmatpush3.bf16.msra.mxu1 %v370_v11  ;;  %375 = vmatprep.subr.bf16.mxu0 %v432_v0  ;;  %p412_p11 = por %p411_p10, %p410_p9 }
  0x1d   :  { %p413_p12 = pnand %p412_p11, %p406_p8 }
  0x1e   :  { %377 = vmatpush3.bf16.msra.mxu0 %v376_v23 }
  0xec   :  { %v119_v13 = vpop.f32.mrb[0].mxu0 }
  0xed   :  { %v120_v14 = vadd.f32 %v315_v12, %v119_v13  ;;  %v340_v15 = vpop.f32.mrb[1].mxu0 }
  0xef   :  { %v123_v16 = vmul.f32 0.01, %v120_v14 }
  0xf1   :  { %v124_v17 = vmax.f32 %v120_v14, %v123_v16 }
  0xf3   :  { %350 = vmatmul.mubr.msk.f32.vlgmr.msra.gmra.mrb[0].mxu1 %vm136_vm2, %v124_v17 }
 0x1c6   :  { %v206_v25 = vpop.f32.mrb[0].mxu1 }
 0x1c7   :  { %v207_v26 = vadd.f32 %v317_v24, %v206_v25  ;;  %v351_v27 = vpop.f32.mrb[1].mxu1 }
 0x1c9   :  { %v210_v28 = vmul.f32 0.01, %v207_v26 }
 0x1cb   :  { %v211_v29 = vmax.f32 %v207_v26, %v210_v28 }
 0x1cd   :  { %361 = vmatmul.mubr.msk.f32.vlgmr.msra.gmra.mrb[2].mxu0 %vm136_vm2, %v211_v29 }
 0x2a0   :  { %v292_v31 = vpop.f32.mrb[2].mxu0 }
 0x2a1   :  { %v293_v32 = vadd.f32 %v319_v30, %v292_v31  ;;  %v362_v33 = vpop.f32.mrb[3].mxu0 }
 0x2a3   :  { %v296_v34 = vmul.f32 0.01, %v293_v32 }
 0x2a5   :  { %v297_v35 = vmax.f32 %v293_v32, %v296_v34 }
 0x2a7   :  { %299 = vst.msk [vmem:[#allocation5] sm:$0xff] %vm298_vm3, %v297_v35 }
 0x2a8   :  { %416 = shalt.err (!%p413_p12)
}
 0x2a9   :  { %s417_s6 = scalar_lea.hbm %s548_s7, 128 }
 0x2aa   :  { %p418_p13 = scmp.ne.s32.totalorder %s548_s7, %s417_s6  ;;  %p421_p0 = scmp.lt.u32.totalorder %s417_s6, %s548_s7 }
 0x2ac   :  { %p423_p1 = pnand %p421_p0, %p418_p13 }
 0x2ae   :  { %426 = shalt.err (!%p423_p1)
}
 0x2af   :  { %309 = dma.vmem_to_hbm [thread:$0]  %s307_s12, 128, %s548_s7, [#allocation4]  }
 0x2b0   :  { %429 = dma.done.wait [#allocation4], 128  }
 0x2b1   :  { %430 = vsyncadd [#allocation4], 4294967168 }
 0x2b2   :  { %313 = vsyncpa [#allocation3], 1 }
 0x2b3   :  { %314 = vsyncpa [#allocation4], 1 }

</bundles_post_ra>
